<compile_context>
chip_gen: v7x
topology: tpu7x:2x2x1
jax: 0.10.0
libtpu: 0.0.40
codegen_flags: <defaults>
</compile_context>

<pallas_src>
import jax
import jax.numpy as jnp
from jax.experimental import pallas as pl
from jax.experimental.pallas import tpu as pltpu


def _round_up(x, m):
    return ((x + m - 1) // m) * m


# ----------------------------- kernel ---------------------------------------
def _rbf_kernel(xt_ref, a_ref, cwc_ref, y_ref):
    xt = xt_ref[...]                       # (F, TN)    batch-in-lanes X tile
    a = a_ref[...]                         # (F+C, F)   fused const: [L^T ; centers@P]
    cwc = cwc_ref[...]                     # (C, 2)     col0 = -0.5*diag(cPc^T), col1 = w

    f = a.shape[1]

    # One MXU matmul per tile, lane-dense f32 output.
    z = jnp.dot(a, xt, preferred_element_type=jnp.float32)   # (F+C, TN)

    u = z[:f, :]                           # (F, TN) = L^T x
    xc = z[f:, :]                          # (C, TN) = (centers P) x

    # -0.5 * x^T P x = -0.5 * ||L^T x||^2   (VPU square + sublane reduce over F)
    quad = -0.5 * jnp.sum(u * u, axis=0, keepdims=True)       # (1, TN)

    cpc = cwc[:, 0:1]                      # (C, 1)
    w = cwc[:, 1:2]                        # (C, 1)

    # phi = exp(-0.5 (x-c)^T P (x-c)) with center terms folded; exp on the EUP.
    phi = jnp.exp(quad + xc + cpc)                            # (C, TN)

    # y[n] = sum_c w[c] * phi[c, n]  (VPU mul + 16-sublane XLU reduce; no MXU)
    y_ref[...] = jnp.sum(w * phi, axis=0, keepdims=True)      # (1, TN)


# ----------------------------- wrapper ---------------------------------------
def precompute_rbf_constants(centers, precision_elements, weights,
                             *, x_dtype=jnp.bfloat16):
    """Grid-invariant parameter-side constants (hoist out of the per-call path)."""
    C, F = centers.shape
    # jnp.tril_indices is row-major over the lower triangle, matching
    # torch.tril_indices(F, F) element order.
    idx_r, idx_c = jnp.tril_indices(F)
    L = jnp.zeros((F, F), jnp.float32).at[idx_r, idx_c].set(
        precision_elements.astype(jnp.float32))
    P = L @ L.T                                               # (F, F)
    c = centers.astype(jnp.float32)
    cP = c @ P                                                # (C, F)
    A = jnp.concatenate([L.T, cP], axis=0).astype(x_dtype)    # (F+C, F)
    cpc = -0.5 * jnp.sum(cP * c, axis=1)                      # (C,)
    cwc = jnp.stack([cpc, weights.astype(jnp.float32)], axis=1)  # (C, 2) f32
    return A, cwc


def _choose_tile_n(N, F, tile_n, x_dtype):
    n_lanes = _round_up(N, 128)
    # Prefer >= 8 grid steps (feeds both v7x TensorCores, smooths pipelining) while
    # keeping tiles >= ~32K lanes so the ~0.35us/step grid overhead stays amortized.
    pref = max(32768, -(-N // 8))
    tile_n = min(int(tile_n), pref, n_lanes)
    # VMEM cap sized for v7x (64 MiB physical): double-buffered X + f32 output
    # (output buffer is 8-sublane padded in VMEM).
    x_bytes = jnp.dtype(x_dtype).itemsize
    per_lane = 2 * F * x_bytes + 2 * 8 * 4
    max_tile = max(128, ((40 << 20) // per_lane) // 128 * 128)
    tile_n = min(tile_n, max_tile)
    return max(128, _round_up(tile_n, 128))


def gaussian_rbf_apply(X, A, cwc, *, tile_n=131072):
    """Run the Pallas kernel given precomputed constants A (F+C, F) and cwc (C, 2)."""
    N, F = X.shape
    FC = A.shape[0]
    C = cwc.shape[0]
    assert A.shape == (F + C, F) and cwc.shape == (C, 2)

    tile_n = _choose_tile_n(N, F, tile_n, A.dtype)
    num_tiles = pl.cdiv(N, tile_n)
    n_pad = num_tiles * tile_n

    # Pad-to-tile + dtype cast + transpose fuse into the single relayout pass the
    # batch-in-lanes layout requires anyway (no separate pad pass over X in HBM).
    Xt = jnp.pad(X.astype(A.dtype), ((0, n_pad - N), (0, 0))).T   # (F, n_pad)

    x_bytes = jnp.dtype(A.dtype).itemsize
    vmem_needed = 2 * F * tile_n * x_bytes + 2 * 8 * tile_n * 4 + (2 << 20)
    vmem_limit = int(min(max(vmem_needed, 16 << 20), 56 << 20))

    y2d = pl.pallas_call(
        _rbf_kernel,
        out_shape=jax.ShapeDtypeStruct((1, n_pad), jnp.float32),
        grid_spec=pltpu.PrefetchScalarGridSpec(
            num_scalar_prefetch=0,
            grid=(num_tiles,),
            in_specs=[
                pl.BlockSpec((F, tile_n), lambda i: (0, i)),   # X tile (lane-dense)
                pl.BlockSpec((FC, F), lambda i: (0, 0)),       # fused [L^T ; cP]
                pl.BlockSpec((C, 2), lambda i: (0, 0)),        # [cpc, w]
            ],
            out_specs=pl.BlockSpec((1, tile_n), lambda i: (0, i)),
        ),
        compiler_params=pltpu.CompilerParams(
            dimension_semantics=("parallel",),
            vmem_limit_bytes=vmem_limit),
    )(Xt, A, cwc)

    return y2d.reshape(n_pad)[:N]                              # (N,)


def gaussian_rbf_forward(X, centers, precision_elements, weights,
                         *, tile_n=131072, x_dtype=jnp.bfloat16):
    """Pallas implementation of GaussianRBFNetworkR.forward."""
    A, cwc = precompute_rbf_constants(centers, precision_elements, weights,
                                      x_dtype=x_dtype)
    return gaussian_rbf_apply(X, A, cwc, tile_n=tile_n)


# ----------------------------- reference -------------------------------------
def _reference_forward(X, centers, precision_elements, weights):
    """Pure-JAX reference matching the PyTorch forward exactly."""
    F = X.shape[1]
    idx_r, idx_c = jnp.tril_indices(F)
    L = jnp.zeros((F, F), jnp.float32).at[idx_r, idx_c].set(
        precision_elements.astype(jnp.float32))
    P = L @ L.T
    diff = X[:, None, :] - centers[None, :, :]                 # (N, C, F)
    quad = jnp.einsum('ijk,kl,ijl->ij', diff, P, diff)
    return jnp.exp(-0.5 * quad) @ weights


if __name__ == "__main__":
    # Small shapes consistent with the module: n_features=8, n_centers=16, batch=32.
    N, F, C = 32, 8, 16
    key = jax.random.PRNGKey(0)
    k1, k2, k3, k4 = jax.random.split(key, 4)

    X = jax.random.normal(k1, (N, F), dtype=jnp.float32)
    precision_elements = 0.3 * jax.random.normal(
        k2, (F * (F + 1) // 2,), dtype=jnp.float32)
    centers = jax.random.normal(k3, (C, F), dtype=jnp.float32)
    weights = jax.random.normal(k4, (C,), dtype=jnp.float32)

    y_ref = _reference_forward(X, centers, precision_elements, weights)

    # Exact f32 path.
    y_f32 = jax.block_until_ready(
        gaussian_rbf_forward(X, centers, precision_elements, weights,
                             x_dtype=jnp.float32))
    assert y_f32.shape == (N,)
    assert jnp.allclose(y_f32, y_ref, atol=1e-4, rtol=1e-4), (
        f"f32 max abs err {jnp.max(jnp.abs(y_f32 - y_ref))}")

    # Default bf16-streaming path (halves HBM bytes of X on v6e/v7x/v5e).
    y_bf16 = jax.block_until_ready(
        gaussian_rbf_forward(X, centers, precision_elements, weights))
    assert jnp.allclose(y_bf16, y_ref, atol=5e-2, rtol=5e-2), (
        f"bf16 max abs err {jnp.max(jnp.abs(y_bf16 - y_ref))}")

    # Ragged batch (exercises the pad-to-tile path; no N % tile_n restriction).
    N2 = 37
    X2 = jax.random.normal(jax.random.PRNGKey(1), (N2, F), dtype=jnp.float32)
    y2 = jax.block_until_ready(
        gaussian_rbf_forward(X2, centers, precision_elements, weights,
                             x_dtype=jnp.float32))
    y2_ref = _reference_forward(X2, centers, precision_elements, weights)
    assert y2.shape == (N2,)
    assert jnp.allclose(y2, y2_ref, atol=1e-4, rtol=1e-4), (
        f"ragged max abs err {jnp.max(jnp.abs(y2 - y2_ref))}")

    print("KERNEL_OK")
</pallas_src>

<mosaic_0001>
module attributes {stable_mosaic.version = 11 : i64} {
  func.func @_rbf_kernel(%arg0: i32, %arg1: memref<8x128xf32, #tpu.memory_space<vmem>>, %arg2: memref<24x8xf32, #tpu.memory_space<vmem>>, %arg3: memref<16x2xf32, #tpu.memory_space<vmem>>, %arg4: memref<1x128xf32, #tpu.memory_space<vmem>>) attributes {dimension_semantics = [#tpu.dimension_semantics<parallel>], iteration_bounds = array<i64: 1>, scalar_prefetch = 0 : i64, scratch_operands = 0 : i64, tpu.core_type = #tpu.core_type<tc>, window_params = [{transform_indices = @transform_0, window_bounds = array<i64: 8, 128>}, {pipeline_mode = #tpu.pipeline_mode<synchronous>, transform_indices = @transform_1, window_bounds = array<i64: 24, 8>}, {pipeline_mode = #tpu.pipeline_mode<synchronous>, transform_indices = @transform_2, window_bounds = array<i64: 16, 2>}, {transform_indices = @transform_3, window_bounds = array<i64: 1, 128>}]} {
    %c0 = arith.constant 0 : index
    %c0_0 = arith.constant 0 : index
    %0 = vector.load %arg1[%c0, %c0_0] : memref<8x128xf32, #tpu.memory_space<vmem>>, vector<8x128xf32>
    %c0_1 = arith.constant 0 : index
    %c0_2 = arith.constant 0 : index
    %1 = vector.load %arg2[%c0_1, %c0_2] : memref<24x8xf32, #tpu.memory_space<vmem>>, vector<24x8xf32>
    %c0_3 = arith.constant 0 : index
    %c0_4 = arith.constant 0 : index
    %2 = vector.load %arg3[%c0_3, %c0_4] : memref<16x2xf32, #tpu.memory_space<vmem>>, vector<16x2xf32>
    %cst = arith.constant dense<0.000000e+00> : vector<24x128xf32>
    %3 = tpu.matmul %1, %0, %cst {dimension_numbers = #tpu.dot_dimension_numbers<[1], [0], [0], [1], [0, 0, 1, 1], [], []>} : vector<24x8xf32>, vector<8x128xf32>, vector<24x128xf32> -> vector<24x128xf32>
    %4 = vector.extract_strided_slice %3 {offsets = [0, 0], sizes = [8, 128], strides = [1, 1]} : vector<24x128xf32> to vector<8x128xf32>
    %5 = vector.extract_strided_slice %3 {offsets = [8, 0], sizes = [16, 128], strides = [1, 1]} : vector<24x128xf32> to vector<16x128xf32>
    %6 = arith.mulf %4, %4 : vector<8x128xf32>
    %cst_5 = arith.constant dense<0.000000e+00> : vector<128xf32>
    %7 = vector.multi_reduction <add>, %6, %cst_5 [0] : vector<8x128xf32> to vector<128xf32>
    %8 = vector.shape_cast %7 : vector<128xf32> to vector<1x128xf32>
    %cst_6 = arith.constant -5.000000e-01 : f32
    %9 = vector.broadcast %cst_6 : f32 to vector<1x128xf32>
    %10 = arith.mulf %9, %8 : vector<1x128xf32>
    %11 = vector.extract_strided_slice %2 {offsets = [0, 0], sizes = [16, 1], strides = [1, 1]} : vector<16x2xf32> to vector<16x1xf32>
    %12 = vector.extract_strided_slice %2 {offsets = [0, 1], sizes = [16, 1], strides = [1, 1]} : vector<16x2xf32> to vector<16x1xf32>
    %13 = vector.broadcast %10 : vector<1x128xf32> to vector<16x128xf32>
    %14 = arith.addf %13, %5 : vector<16x128xf32>
    %15 = vector.broadcast %11 : vector<16x1xf32> to vector<16x128xf32>
    %16 = arith.addf %14, %15 : vector<16x128xf32>
    %17 = math.exp %16 : vector<16x128xf32>
    %18 = vector.broadcast %12 : vector<16x1xf32> to vector<16x128xf32>
    %19 = arith.mulf %18, %17 : vector<16x128xf32>
    %cst_7 = arith.constant dense<0.000000e+00> : vector<128xf32>
    %20 = vector.multi_reduction <add>, %19, %cst_7 [0] : vector<16x128xf32> to vector<128xf32>
    %21 = vector.shape_cast %20 : vector<128xf32> to vector<1x128xf32>
    %c0_8 = arith.constant 0 : index
    %c0_9 = arith.constant 0 : index
    %22 = vector.load %arg4[%c0_8, %c0_9] : memref<1x128xf32, #tpu.memory_space<vmem>>, vector<1x128xf32>
    tpu.vector_store %arg4[%c0_8, %c0_9], %21 {strides = array<i32>} : memref<1x128xf32, #tpu.memory_space<vmem>>, vector<1x128xf32>,
    return
  }
  func.func @transform_0(%arg0: i32) -> (i32, i32) {
    %c0_i32 = arith.constant 0 : i32
    %c0_i32_0 = arith.constant 0 : i32
    return %c0_i32, %arg0 : i32, i32
  }
  func.func @transform_1(%arg0: i32) -> (i32, i32) {
    %c0_i32 = arith.constant 0 : i32
    %c0_i32_0 = arith.constant 0 : i32
    %c0_i32_1 = arith.constant 0 : i32
    return %c0_i32, %c0_i32_0 : i32, i32
  }
  func.func @transform_2(%arg0: i32) -> (i32, i32) {
    %c0_i32 = arith.constant 0 : i32
    %c0_i32_0 = arith.constant 0 : i32
    %c0_i32_1 = arith.constant 0 : i32
    return %c0_i32, %c0_i32_0 : i32, i32
  }
  func.func @transform_3(%arg0: i32) -> (i32, i32) {
    %c0_i32 = arith.constant 0 : i32
    %c0_i32_0 = arith.constant 0 : i32
    return %c0_i32, %arg0 : i32, i32
  }
}

</mosaic_0001>

<bundles_post_ra>
// kernel: tpu_custom_call.1
= control target key start
LH: loop header
LB: loop body
LE: loop exit
PB: predicated region body
PF: predicated region fallthrough
CT: control target
= control target key end

     0   :  { %vm21_vm0 = vcmask 64512   ;;  %v225_v2 = vmov 0.0   ;;  %vm226_vm1 = vmmov 0   ;;  %s283_s0 = inlined_call_operand.vmem [shape: f32[8,128], index: 0, kind: input, shape index: {}]   ;;  %s284_s1 = inlined_call_operand.vmem [shape: f32[24,8], index: 1, kind: input, shape index: {}]   ;;  %s285_s2 = inlined_call_operand.vmem [shape: f32[16,2], index: 2, kind: input, shape index: {}]   ;;  %s286_s3 = inlined_call_operand.hbm [shape: f32[1,128], index: 3, kind: output, shape index: {}]  }
   0x1   :  { %v15_v0 = vld [vmem:[%s283_s0] sm:$0xff]  ;;  %176 = vmatprep.subr.mxu0 %v225_v2  ;;  %178 = vmatprep.mubr.msk.f32.mxu0 %vm226_vm1, %v225_v2  ;;  %v17_v3 = vld [vmem:[%s284_s1 + $0x8] sm:$0xff] }
   0x2   :  { %v16_v1 = vld [vmem:[%s284_s1] sm:$0xff]  ;;  %177 = vmatpush3.msra.mxu0 %v15_v0  ;;  %187 = vmatprep.subr.mxu1 %v225_v2 }
   0x3   :  { %v19_v4 = vld [vmem:[%s285_s2] sm:$0xff] }
   0x4   :  { %8 = vsyncpa [#allocation3], 0  ;;  %179 = vmatmul.mubr.msk.f32.vlgmr.msra.gmra.mrb[0].mxu0 %vm21_vm0, %v16_v1  ;;  %188 = vmatpush3.msra.mxu1 %v15_v0  ;;  %v227_v5 = vmov 0   ;;  %v18_v6 = vld [vmem:[%s284_s1 + $0x10] sm:$0xff]  ;;  %v20_v7 = vld [vmem:[%s285_s2 + $0x8] sm:$0xff]  ;;  %v228_v8 = vmov 1  }
   0x5   :  { %181 = vmatprep.mubr.msk.f32.mxu1 %vm226_vm1, %v225_v2  ;;  %194 = vset.pattern.permute.xlu0 %v227_v5  ;;  %s229_s1 = smov [#allocation2]  }
   0x6   :  { %182 = vmatmul.mubr.msk.f32.vlgmr.msra.gmra.mrb[0].mxu1 %vm21_vm0, %v17_v3  ;;  %123 = vperm.xlu0 %194, %v19_v4   ;;  %s161_s2 = sshll.u32 %s229_s1, 4  ;;  %s162_s2 = int_to_ptr.vmem [resolvable:$true] %s161_s2 }
   0x7   :  { %184 = vmatprep.mubr.msk.f32.mxu1 %vm226_vm1, %v225_v2  ;;  %195 = vset.pattern.permute.xlu1 %v228_v8  ;;  %s201_s23 = scalar_lea.vmem %s162_s2, 16  ;;  %s205_s24 = scalar_lea.vmem %s162_s2, 32 }
   0x8   :  { %138 = vperm.xlu1 %195, %v19_v4   ;;  %p202_p0 = scmp.ne.s32.totalorder %s162_s2, %s201_s23  ;;  %p206_p1 = scmp.lt.s32.totalorder %s162_s2, %s162_s2 }
   0x9   :  { %p207_p2 = scmp.lt.s32.totalorder %s205_s24, %s201_s23 }
   0xa   :  { %185 = vmatmul.mubr.msk.f32.gmra.mrb[2].mxu1 %vm21_vm0, %v18_v6  ;;  %128 = vperm.xlu0 %194, %v20_v7  }
   0xb   :  { %p208_p3 = por %p207_p2, %p206_p1 }
   0xc   :  { %142 = vperm.xlu1 %195, %v20_v7  }
   0xd   :  { %p209_p4 = pnand %p208_p3, %p202_p0 }
   0xe   :  { %196 = vset.pattern.permute.xlu0 %v228_v8 }
  0x85   :  { %v124_v21 = vpop.permute.xlu0 %123 }
  0x87   :  { %v139_v31 = vpop.permute.xlu1 %138 }
  0x89   :  { %v129_v26 = vpop.permute.xlu0 %128 }
  0x8b   :  { %v143_v35 = vpop.permute.xlu1 %142 }
  0xd7   :  { %v97_v9 = vpop.f32.mrb[0].mxu0 }
  0xd8   :  { %v111_v10 = vmul.f32 %v97_v9, %v97_v9  ;;  %v180_v11 = vpop.f32.mrb[1].mxu0 }
  0xd9   :  { %v102_v12 = vpop.f32.mrb[0].mxu1 }
  0xda   :  { %v112_v13 = vrot.slane %v111_v10, 4  ;;  %v183_v14 = vpop.f32.mrb[1].mxu1 }
  0xdc   :  { %v113_v15 = vadd.f32 %v112_v13, %v111_v10 }
  0xdd   :  { %v107_v16 = vpop.f32.mrb[2].mxu1 }
  0xde   :  { %v114_v17 = vrot.slane %v113_v15, 2  ;;  %v186_v18 = vpop.f32.mrb[3].mxu1 }
  0xe0   :  { %v115_v19 = vadd.f32 %v114_v17, %v113_v15 }
  0xe2   :  { %v116_v20 = vrot.slane %v115_v19, 1 }
  0xe4   :  { %v117_v22 = vadd.f32 %v116_v20, %v115_v19 }
  0xe6   :  { %v118_v23 = vmul.f32 -0.5, %v117_v22 }
  0xe8   :  { %v119_v24 = vadd.f32 %v118_v23, %v102_v12  ;;  %v120_v25 = vadd.f32 %v118_v23, %v107_v16 }
  0xea   :  { %v131_v27 = vadd.f32 %v124_v21, %v119_v24  ;;  %v132_v28 = vadd.f32 %v129_v26, %v120_v25 }
  0xec   :  { %v133_v29 = vmul.f32 1.442695, %v131_v27  ;;  %v135_v30 = vmul.f32 1.442695, %v132_v28 }
  0xee   :  { %197 = vpow2.f32 %v133_v29 }
  0xef   :  { %199 = vpow2.f32 %v135_v30 }
  0xf8   :  { %v198_v32 = vpop.eup %197 }
  0xf9   :  { %v200_v33 = vpop.eup %199  ;;  %v145_v34 = vmul.f32 %v198_v32, %v139_v31 }
  0xfa   :  { %v146_v36 = vmul.f32 %v200_v33, %v143_v35 }
  0xfc   :  { %v147_v37 = vadd.f32 %v146_v36, %v145_v34 }
  0xfe   :  { %v148_v38 = vrot.slane %v147_v37, 4 }
 0x100   :  { %v149_v39 = vadd.f32 %v148_v38, %v147_v37 }
 0x102   :  { %v150_v40 = vrot.slane %v149_v39, 2 }
 0x104   :  { %v151_v41 = vadd.f32 %v150_v40, %v149_v39 }
 0x106   :  { %v152_v42 = vrot.slane %v151_v41, 1 }
 0x108   :  { %v153_v43 = vadd.f32 %v152_v42, %v151_v41 }
 0x10a   :  { %154 = vst [vmem:[#allocation2] sm:$0x1] %v153_v43 }
 0x10b   :  { %212 = shalt.err (!%p209_p4)
}
 0x10c   :  { %s213_s27 = scalar_lea.hbm %s286_s3, 16 }
 0x10d   :  { %p214_p5 = scmp.ne.s32.totalorder %s286_s3, %s213_s27  ;;  %p217_p6 = scmp.lt.u32.totalorder %s213_s27, %s286_s3 }
 0x10f   :  { %p219_p7 = pnand %p217_p6, %p214_p5 }
 0x111   :  { %222 = shalt.err (!%p219_p7)
}
 0x112   :  { %164 = dma.vmem_to_hbm [thread:$0]  %s162_s2, 16, %s286_s3, [#allocation3]  }
 0x113   :  { %223 = dma.done.wait [#allocation3], 16  }
 0x114   :  { %224 = vsyncadd [#allocation3], 4294967280 }
 0x115   :  { %168 = vsyncpa [#allocation3], 1 }

</bundles_post_ra>
